<compile_context>
chip_gen: v6e
topology: v6e:2x2x1
jax: 0.10.0
libtpu: 0.0.40
codegen_flags: <defaults>
</compile_context>

<pallas_src>
import jax
import jax.numpy as jnp
from jax.experimental import pallas as pl
from jax.experimental.pallas import tpu as pltpu

# Small shapes consistent with the module structure (real: L=15, C=1000, Z=128, IMG=128+)
NUM_LATENTS = 4        # len(biggan.config.layers) + 1
NUM_CLASSES = 32       # biggan.config.num_classes
Z_DIM = 16             # biggan.config.z_dim
IMG = 16               # image_size (small for demo)
PIX = 3 * IMG * IMG    # 768 — flat pixel count, multiple of 128 (lane-dense)

LZ = NUM_LATENTS * Z_DIM            # 64
K_FUSED = 2 * LZ                    # 128 — fused MXU contraction dim
LC = NUM_LATENTS * NUM_CLASSES      # 128


def bigsleep_forward_kernel(normu_ref, cls_ref, wembbig_ref, w_ref, b_ref, out_ref):
    # ---- Latents.forward(): classes = sigmoid(cls) (max_classes is None) ----
    classes = jax.nn.sigmoid(cls_ref[...])                               # (1, L*C) f32

    # ---- class-conditioning embedding (BigGAN class-embedding analogue) ----
    # Block-diagonal, lane-padded weight → emb lands directly in the upper
    # half of the fused K axis; lower half of the result is zero.
    emb_pad = jnp.dot(classes.astype(jnp.bfloat16), wembbig_ref[...],
                      preferred_element_type=jnp.float32)                # (1, 2*L*Z)

    # lhs = [normu_flat | emb_flat]  (normu_ref is zero-padded in its upper half)
    lhs = normu_ref[...] + emb_pad                                       # (1, 128) f32

    # TODO(synk): the pretrained BigGAN-deep generator stack (resblocks, attention,
    # upsampling convs) has no in-script equivalent; replaced by a single fused
    # linear generator stand-in below.
    # Single fused K=128 MXU matmul, bias folded into the accumulator init.
    acc = b_ref[...] + jnp.dot(lhs.astype(jnp.bfloat16), w_ref[...],
                               preferred_element_type=jnp.float32)       # (1, PIX)

    img = jnp.tanh(acc)                     # generator output in [-1, 1]
    # ---- Model.forward(): (out + 1) / 2 ----
    out_ref[...] = (img + 1.0) * 0.5


def prepare_weights(w_emb, w_z, w_e):
    """One-time wrapper-side weight preparation (reshape / pad / bf16 cast)."""
    L, Z, P = w_z.shape
    C = w_emb.shape[0]
    lz = L * Z
    # Block-diagonal class embedding: emb_flat[l*Z+z] = sum_c classes[l,c]*w_emb[c,z].
    # Pad with zero columns so its output occupies the UPPER half of the fused K axis.
    w_emb_blockdiag = jnp.kron(jnp.eye(L, dtype=w_emb.dtype), w_emb)        # (L*C, L*Z)
    w_emb_big = jnp.concatenate(
        [jnp.zeros((L * C, lz), w_emb.dtype), w_emb_blockdiag], axis=-1
    ).astype(jnp.bfloat16)                                                  # (L*C, 2*L*Z)
    # Fused generator weight slab: rows [0:LZ) multiply normu, rows [LZ:2LZ) multiply emb.
    W = jnp.concatenate([w_z.reshape(lz, P), w_e.reshape(lz, P)],
                        axis=0).astype(jnp.bfloat16)                        # (2*L*Z, PIX)
    return w_emb_big, W


@jax.jit
def bigsleep_forward(normu, cls, w_emb_big, W, b):
    # Cheap wrapper-side (XLA) flattening / zero-padding of the per-step latents.
    normu_pad = jnp.concatenate(
        [normu.reshape(1, LZ), jnp.zeros((1, LZ), normu.dtype)], axis=-1)   # (1, 2*L*Z)
    cls_flat = cls.reshape(1, LC)                                           # (1, L*C)

    # Single grid step: every operand fits VMEM, so one full-array block avoids
    # per-step launch overhead and prologue recomputation on all generations.
    flat = pl.pallas_call(
        bigsleep_forward_kernel,
        out_shape=jax.ShapeDtypeStruct((1, PIX), jnp.float32),
        grid=(1,),
        in_specs=[
            pl.BlockSpec((1, K_FUSED), lambda i: (0, 0)),      # normu (zero-padded)
            pl.BlockSpec((1, LC), lambda i: (0, 0)),           # cls (flat)
            pl.BlockSpec((LC, K_FUSED), lambda i: (0, 0)),     # block-diag class embedding (bf16)
            pl.BlockSpec((K_FUSED, PIX), lambda i: (0, 0)),    # fused weight slab (bf16)
            pl.BlockSpec((1, PIX), lambda i: (0, 0)),          # bias
        ],
        out_specs=pl.BlockSpec((1, PIX), lambda i: (0, 0)),
        compiler_params=pltpu.CompilerParams(
            dimension_semantics=("arbitrary",)),               # single step; no megacore split
    )(normu_pad, cls_flat, w_emb_big, W, b)

    # NCHW, matching PyTorch: (batch=1, 3, H, W)
    return flat.reshape(1, 3, IMG, IMG)


if __name__ == "__main__":
    key = jax.random.PRNGKey(0)
    k1, k2, k3, k4, k5, k6 = jax.random.split(key, 6)

    # Latents parameters (deterministic, same distributions as the module init)
    normu = jax.random.normal(k1, (NUM_LATENTS, Z_DIM), jnp.float32)                   # std=1
    cls = -3.9 + 0.3 * jax.random.normal(k2, (NUM_LATENTS, NUM_CLASSES), jnp.float32)  # mean=-3.9, std=0.3

    # Synthetic generator weights (deterministic stand-in for pretrained BigGAN)
    w_emb = 0.02 * jax.random.normal(k3, (NUM_CLASSES, Z_DIM), jnp.float32)
    w_z   = 0.02 * jax.random.normal(k4, (NUM_LATENTS, Z_DIM, PIX), jnp.float32)
    w_e   = 0.02 * jax.random.normal(k5, (NUM_LATENTS, Z_DIM, PIX), jnp.float32)
    b     = 0.02 * jax.random.normal(k6, (1, PIX), jnp.float32)

    # One-time weight preparation (reshape / concat / pad / bf16) OUTSIDE the kernel.
    w_emb_big, W = prepare_weights(w_emb, w_z, w_e)

    out = bigsleep_forward(normu, cls, w_emb_big, W, b)
    jax.block_until_ready(out)

    # Pure-JAX f32 reference of the same forward (per-latent form).
    classes_ref = jax.nn.sigmoid(cls)
    emb_ref = classes_ref @ w_emb                                   # (L, Z)
    acc_ref = b[0]
    for l in range(NUM_LATENTS):
        acc_ref = acc_ref + normu[l] @ w_z[l] + emb_ref[l] @ w_e[l]
    ref = ((jnp.tanh(acc_ref) + 1.0) * 0.5).reshape(1, 3, IMG, IMG)

    assert out.shape == (1, 3, IMG, IMG)
    assert bool(jnp.all((out >= 0.0) & (out <= 1.0)))               # (tanh+1)/2 range check
    assert bool(jnp.allclose(out, ref, atol=2e-2))                  # bf16-weight tolerance
    print("KERNEL_OK")
</pallas_src>

<mosaic_0001>
module attributes {stable_mosaic.version = 11 : i64} {
  func.func @bigsleep_forward_kernel(%arg0: i32, %arg1: memref<1x128xf32, #tpu.memory_space<vmem>>, %arg2: memref<1x128xf32, #tpu.memory_space<vmem>>, %arg3: memref<128x128xbf16, #tpu.memory_space<vmem>>, %arg4: memref<128x768xbf16, #tpu.memory_space<vmem>>, %arg5: memref<1x768xf32, #tpu.memory_space<vmem>>, %arg6: memref<1x768xf32, #tpu.memory_space<vmem>>) attributes {dimension_semantics = [#tpu.dimension_semantics<arbitrary>], iteration_bounds = array<i64: 1>, scalar_prefetch = 0 : i64, scratch_operands = 0 : i64, tpu.core_type = #tpu.core_type<tc>, window_params = [{pipeline_mode = #tpu.pipeline_mode<synchronous>, transform_indices = @transform_0, window_bounds = array<i64: 1, 128>}, {pipeline_mode = #tpu.pipeline_mode<synchronous>, transform_indices = @transform_1, window_bounds = array<i64: 1, 128>}, {pipeline_mode = #tpu.pipeline_mode<synchronous>, transform_indices = @transform_2, window_bounds = array<i64: 128, 128>}, {pipeline_mode = #tpu.pipeline_mode<synchronous>, transform_indices = @transform_3, window_bounds = array<i64: 128, 768>}, {pipeline_mode = #tpu.pipeline_mode<synchronous>, transform_indices = @transform_4, window_bounds = array<i64: 1, 768>}, {pipeline_mode = #tpu.pipeline_mode<synchronous>, transform_indices = @transform_5, window_bounds = array<i64: 1, 768>}]} {
    %c0 = arith.constant 0 : index
    %c0_0 = arith.constant 0 : index
    %0 = vector.load %arg2[%c0, %c0_0] : memref<1x128xf32, #tpu.memory_space<vmem>>, vector<1x128xf32>
    %1 = arith.negf %0 : vector<1x128xf32>
    %2 = math.exp %1 : vector<1x128xf32>
    %cst = arith.constant 1.000000e+00 : f32
    %3 = vector.broadcast %cst : f32 to vector<1x128xf32>
    %4 = arith.addf %3, %2 : vector<1x128xf32>
    %5 = arith.divf %3, %4 : vector<1x128xf32>
    %6 = arith.truncf %5 : vector<1x128xf32> to vector<1x128xbf16>
    %c0_1 = arith.constant 0 : index
    %c0_2 = arith.constant 0 : index
    %7 = vector.load %arg3[%c0_1, %c0_2] : memref<128x128xbf16, #tpu.memory_space<vmem>>, vector<128x128xbf16>
    %cst_3 = arith.constant dense<0.000000e+00> : vector<1x128xf32>
    %8 = tpu.matmul %6, %7, %cst_3 {dimension_numbers = #tpu.dot_dimension_numbers<[1], [0], [0], [1], [0, 0, 1, 1], [], []>} : vector<1x128xbf16>, vector<128x128xbf16>, vector<1x128xf32> -> vector<1x128xf32>
    %c0_4 = arith.constant 0 : index
    %c0_5 = arith.constant 0 : index
    %9 = vector.load %arg1[%c0_4, %c0_5] : memref<1x128xf32, #tpu.memory_space<vmem>>, vector<1x128xf32>
    %10 = arith.addf %9, %8 : vector<1x128xf32>
    %c0_6 = arith.constant 0 : index
    %c0_7 = arith.constant 0 : index
    %11 = vector.load %arg5[%c0_6, %c0_7] : memref<1x768xf32, #tpu.memory_space<vmem>>, vector<1x768xf32>
    %12 = arith.truncf %10 : vector<1x128xf32> to vector<1x128xbf16>
    %c0_8 = arith.constant 0 : index
    %c0_9 = arith.constant 0 : index
    %13 = vector.load %arg4[%c0_8, %c0_9] : memref<128x768xbf16, #tpu.memory_space<vmem>>, vector<128x768xbf16>
    %cst_10 = arith.constant dense<0.000000e+00> : vector<1x768xf32>
    %14 = tpu.matmul %12, %13, %cst_10 {dimension_numbers = #tpu.dot_dimension_numbers<[1], [0], [0], [1], [0, 0, 1, 1], [], []>} : vector<1x128xbf16>, vector<128x768xbf16>, vector<1x768xf32> -> vector<1x768xf32>
    %15 = arith.addf %11, %14 : vector<1x768xf32>
    %16 = math.tanh %15 : vector<1x768xf32>
    %cst_11 = arith.constant 1.000000e+00 : f32
    %17 = vector.broadcast %cst_11 : f32 to vector<1x768xf32>
    %18 = arith.addf %16, %17 : vector<1x768xf32>
    %cst_12 = arith.constant 5.000000e-01 : f32
    %19 = vector.broadcast %cst_12 : f32 to vector<1x768xf32>
    %20 = arith.mulf %18, %19 : vector<1x768xf32>
    %c0_13 = arith.constant 0 : index
    %c0_14 = arith.constant 0 : index
    %21 = vector.load %arg6[%c0_13, %c0_14] : memref<1x768xf32, #tpu.memory_space<vmem>>, vector<1x768xf32>
    tpu.vector_store %arg6[%c0_13, %c0_14], %20 {strides = array<i32>} : memref<1x768xf32, #tpu.memory_space<vmem>>, vector<1x768xf32>,
    return
  }
  func.func @transform_0(%arg0: i32) -> (i32, i32) {
    %c0_i32 = arith.constant 0 : i32
    %c0_i32_0 = arith.constant 0 : i32
    %c0_i32_1 = arith.constant 0 : i32
    return %c0_i32, %c0_i32_0 : i32, i32
  }
  func.func @transform_1(%arg0: i32) -> (i32, i32) {
    %c0_i32 = arith.constant 0 : i32
    %c0_i32_0 = arith.constant 0 : i32
    %c0_i32_1 = arith.constant 0 : i32
    return %c0_i32, %c0_i32_0 : i32, i32
  }
  func.func @transform_2(%arg0: i32) -> (i32, i32) {
    %c0_i32 = arith.constant 0 : i32
    %c0_i32_0 = arith.constant 0 : i32
    %c0_i32_1 = arith.constant 0 : i32
    return %c0_i32, %c0_i32_0 : i32, i32
  }
  func.func @transform_3(%arg0: i32) -> (i32, i32) {
    %c0_i32 = arith.constant 0 : i32
    %c0_i32_0 = arith.constant 0 : i32
    %c0_i32_1 = arith.constant 0 : i32
    return %c0_i32, %c0_i32_0 : i32, i32
  }
  func.func @transform_4(%arg0: i32) -> (i32, i32) {
    %c0_i32 = arith.constant 0 : i32
    %c0_i32_0 = arith.constant 0 : i32
    %c0_i32_1 = arith.constant 0 : i32
    return %c0_i32, %c0_i32_0 : i32, i32
  }
  func.func @transform_5(%arg0: i32) -> (i32, i32) {
    %c0_i32 = arith.constant 0 : i32
    %c0_i32_0 = arith.constant 0 : i32
    %c0_i32_1 = arith.constant 0 : i32
    return %c0_i32, %c0_i32_0 : i32, i32
  }
}

</mosaic_0001>

<bundles_post_ra>
// kernel: bigsleep_forward.1
= control target key start
LH: loop header
LB: loop body
LE: loop exit
PB: predicated region body
PF: predicated region fallthrough
CT: control target
= control target key end

     0   :  { %10 = vsyncpa [#allocation3], 0  ;;  %s922_s0 = inlined_call_operand.vmem [shape: f32[1,128], index: 0, kind: input, shape index: {}]   ;;  %s923_s1 = inlined_call_operand.vmem [shape: f32[1,128], index: 1, kind: input, shape index: {}]   ;;  %s924_s2 = inlined_call_operand.hbm [shape: bf16[128,128], index: 2, kind: input, shape index: {}]   ;;  %s925_s3 = inlined_call_operand.hbm [shape: bf16[128,768], index: 3, kind: input, shape index: {}]   ;;  %s926_s4 = inlined_call_operand.vmem [shape: f32[1,768], index: 4, kind: input, shape index: {}]   ;;  %s927_s5 = inlined_call_operand.vmem [shape: f32[1,768], index: 5, kind: output, shape index: {}]  }
   0x1   :  { %11 = vsyncpa [#allocation5], 0  ;;  %s864_s18 = smov [#allocation2]  }
   0x2   :  { %s21_s19 = sshll.u32 %s864_s18, 4  ;;  %s22_s19 = int_to_ptr.vmem [resolvable:$true] %s21_s19 }
   0x3   :  { %s828_s20 = scalar_lea.vmem %s22_s19, 1024  ;;  %p833_p1 = scmp.lt.s32.totalorder %s22_s19, %s22_s19 }
   0x4   :  { %p829_p0 = scmp.ne.s32.totalorder %s22_s19, %s828_s20  ;;  %p834_p2 = scmp.lt.s32.totalorder %s828_s20, %s828_s20 }
   0x6   :  { %p835_p3 = por %p834_p2, %p833_p1 }
   0x8   :  { %p836_p4 = pnand %p835_p3, %p829_p0 }
   0xa   :  { %839 = shalt.err (!%p836_p4)
}
   0xb   :  { %s865_s21 = smov 64   ;;  %s866_s22 = smov 4  }
   0xc   :  { %27 = dma.hbm_to_vmem [thread:$0]  %s924_s2, 1024, %s22_s19, [#allocation3], %s865_s21, %s865_s21, %s866_s22  }
   0xd   :  { %s867_s25 = smov [#allocation4]  }
   0xe   :  { %s33_s26 = sshll.u32 %s867_s25, 4  ;;  %s34_s26 = int_to_ptr.vmem [resolvable:$true] %s33_s26 }
   0xf   :  { %s848_s27 = scalar_lea.vmem %s34_s26, 6144  ;;  %p853_p6 = scmp.lt.s32.totalorder %s34_s26, %s34_s26 }
  0x10   :  { %p849_p5 = scmp.ne.s32.totalorder %s34_s26, %s848_s27  ;;  %p854_p7 = scmp.lt.s32.totalorder %s848_s27, %s848_s27 }
  0x12   :  { %p855_p8 = por %p854_p7, %p853_p6 }
  0x14   :  { %p856_p9 = pnand %p855_p8, %p849_p5 }
  0x16   :  { %859 = shalt.err (!%p856_p9)
}
  0x17   :  { %s868_s28 = smov 384   ;;  %s869_s29 = smov 24  }
  0x18   :  { %39 = dma.hbm_to_vmem [thread:$0]  %s925_s3, 6144, %s34_s26, [#allocation5], %s868_s28, %s868_s28, %s869_s29  }
  0x19   :  { %860 = dma.done.wait [#allocation3], 1024  }
  0x1a   :  { %861 = vsyncadd [#allocation3], 4294966272 }
  0x1b   :  { %862 = dma.done.wait [#allocation5], 6144  }
  0x1c   :  { %863 = vsyncadd [#allocation5], 4294961152  ;;  %v870_v0 = vmov 0.0   ;;  %vm871_vm0 = vmmov 0   ;;  %v734_v1 = vld [vmem:[#allocation2 + $0x38] sm:$0xff]   ;;  %v735_v2 = vld [vmem:[#allocation2 + $0x30] sm:$0xff]  }
  0x1d   :  { %704 = vmatprep.subr.bf16.mxu0 %v870_v0  ;;  %720 = vmatprep.mubr.msk.bf16.mxu0 %vm871_vm0, %v870_v0  ;;  %v736_v3 = vld [vmem:[#allocation2 + $0x28] sm:$0xff]   ;;  %v49_v4 = vld [vmem:[%s923_s1] sm:$0x1]  ;;  %v748_v9 = vld [vmem:[#allocation4 + $0x124] ss:$24 sps:$4 sm:$0xff]   ;;  %v872_v48 = vmov 0  }
  0x1e   :  { %705 = vmatpush3.bf16.msra.mxu0 %v734_v1  ;;  %v638_v5 = vmul.f32 -1.442695, %v49_v4  ;;  %v742_v6 = vld [vmem:[#allocation4 + $0x154] ss:$24 sps:$4 sm:$0xff]   ;;  %v744_v7 = vld [vmem:[#allocation4 + $0x150] ss:$24 sps:$4 sm:$0xff]   ;;  %485 = vmatprep.mubr.bf16.mxu1 %v872_v48 }
  0x1f   :  { %706 = vmatprep.subr.bf16.mxu0 %v870_v0  ;;  %v737_v8 = vld [vmem:[#allocation2 + $0x20] sm:$0xff]   ;;  %453 = vmatprep.subr.bf16.mxu1 %v742_v6  ;;  %v738_v11 = vld [vmem:[#allocation2 + $0x18] sm:$0xff]   ;;  %v754_v12 = vld [vmem:[#allocation4 + $0xf4] ss:$24 sps:$4 sm:$0xff]  }
  0x20   :  { %814 = vpow2.f32 %v638_v5  ;;  %454 = vmatpush1.bf16.msra.mxu1 %v744_v7  ;;  %v750_v10 = vld [vmem:[#allocation4 + $0x120] ss:$24 sps:$4 sm:$0xff]   ;;  %v756_v13 = vld [vmem:[#allocation4 + $0xf0] ss:$24 sps:$4 sm:$0xff]   ;;  %v760_v14 = vld [vmem:[#allocation4 + $0xc4] ss:$24 sps:$4 sm:$0xff]  }
  0x21   :  { %455 = vmatprep.subr.bf16.mxu1 %v748_v9  ;;  %v739_v15 = vld [vmem:[#allocation2 + $0x10] sm:$0xff]   ;;  %v762_v16 = vld [vmem:[#allocation4 + $0xc0] ss:$24 sps:$4 sm:$0xff]   ;;  %v740_v18 = vld [vmem:[#allocation2 + $0x8] sm:$0xff]  }
  0x22   :  { %707 = vmatpush3.bf16.msra.mxu0 %v735_v2  ;;  %v766_v17 = vld [vmem:[#allocation4 + $0x94] ss:$24 sps:$4 sm:$0xff]   ;;  %v741_v20 = vld [vmem:[#allocation2] sm:$0xff]   ;;  %v768_v21 = vld [vmem:[#allocation4 + $0x90] ss:$24 sps:$4 sm:$0xff]  }
  0x23   :  { %708 = vmatprep.subr.bf16.mxu0 %v870_v0  ;;  %v747_v23 = vld [vmem:[#allocation4 + $0x15c] ss:$24 sps:$4 sm:$0xff]   ;;  %v774_v25 = vld [vmem:[#allocation4 + $0x60] ss:$24 sps:$4 sm:$0xff]   ;;  %v780_v27 = vld [vmem:[#allocation4 + $0x30] ss:$24 sps:$4 sm:$0xff]  }
  0x24   :  { %456 = vmatpush1.bf16.msra.mxu1 %v750_v10  ;;  %v772_v24 = vld [vmem:[#allocation4 + $0x64] ss:$24 sps:$4 sm:$0xff]   ;;  %v778_v26 = vld [vmem:[#allocation4 + $0x34] ss:$24 sps:$4 sm:$0xff]   ;;  %v745_v29 = vld [vmem:[#allocation4 + $0x158] ss:$24 sps:$4 sm:$0xff]  }
  0x25   :  { %457 = vmatprep.subr.bf16.mxu1 %v754_v12  ;;  %v753_v31 = vld [vmem:[#allocation4 + $0x12c] ss:$24 sps:$4 sm:$0xff]   ;;  %v751_v32 = vld [vmem:[#allocation4 + $0x128] ss:$24 sps:$4 sm:$0xff]   ;;  %v759_v33 = vld [vmem:[#allocation4 + $0xfc] ss:$24 sps:$4 sm:$0xff]  }
  0x26   :  { %709 = vmatpush3.bf16.msra.mxu0 %v736_v3  ;;  %v757_v34 = vld [vmem:[#allocation4 + $0xf8] ss:$24 sps:$4 sm:$0xff]   ;;  %v765_v35 = vld [vmem:[#allocation4 + $0xcc] ss:$24 sps:$4 sm:$0xff]   ;;  %v763_v36 = vld [vmem:[#allocation4 + $0xc8] ss:$24 sps:$4 sm:$0xff]  }
  0x27   :  { %710 = vmatprep.subr.bf16.mxu0 %v870_v0  ;;  %v771_v37 = vld [vmem:[#allocation4 + $0x9c] ss:$24 sps:$4 sm:$0xff]   ;;  %v769_v38 = vld [vmem:[#allocation4 + $0x98] ss:$24 sps:$4 sm:$0xff]   ;;  %v777_v39 = vld [vmem:[#allocation4 + $0x6c] ss:$24 sps:$4 sm:$0xff]  }
  0x28   :  { %458 = vmatpush1.bf16.msra.mxu1 %v756_v13  ;;  %v775_v40 = vld [vmem:[#allocation4 + $0x68] ss:$24 sps:$4 sm:$0xff]   ;;  %v783_v41 = vld [vmem:[#allocation4 + $0x3c] ss:$24 sps:$4 sm:$0xff]   ;;  %v781_v42 = vld [vmem:[#allocation4 + $0x38] ss:$24 sps:$4 sm:$0xff]  }
  0x29   :  { %459 = vmatprep.subr.bf16.mxu1 %v760_v14  ;;  %v784_v43 = vld [vmem:[#allocation4 + $0x4] ss:$24 sps:$4 sm:$0xff]   ;;  %v786_v44 = vld [vmem:[#allocation4] ss:$24 sps:$4 sm:$0xff]   ;;  %v795_v55 = vld [vmem:[#allocation4 + $0x134] ss:$24 sps:$4 sm:$0xff]  }
  0x2a   :  { %711 = vmatpush3.bf16.msra.mxu0 %v737_v8  ;;  %v789_v45 = vld [vmem:[#allocation4 + $0xc] ss:$24 sps:$4 sm:$0xff]   ;;  %v787_v46 = vld [vmem:[#allocation4 + $0x8] ss:$24 sps:$4 sm:$0xff]  }
  0x2b   :  { %712 = vmatprep.subr.bf16.mxu0 %v870_v0  ;;  %v792_v47 = vld [vmem:[#allocation4 + $0x164] ss:$24 sps:$4 sm:$0xff]   ;;  %v161_v49 = vld [vmem:[%s922_s0] sm:$0x1]  ;;  %v793_v58 = vld [vmem:[#allocation4 + $0x130] ss:$24 sps:$4 sm:$0xff]  }
  0x2c   :  { %460 = vmatpush1.bf16.msra.mxu1 %v762_v16  ;;  %v790_v53 = vld [vmem:[#allocation4 + $0x160] ss:$24 sps:$4 sm:$0xff]   ;;  %v798_v59 = vld [vmem:[#allocation4 + $0x104] ss:$24 sps:$4 sm:$0xff]   ;;  %v801_v61 = vld [vmem:[#allocation4 + $0xd4] ss:$24 sps:$4 sm:$0xff]  }
  0x2d   :  { %v815_v19 = vpop.eup %814  ;;  %461 = vmatprep.subr.bf16.mxu1 %v766_v17  ;;  %v796_v60 = vld [vmem:[#allocation4 + $0x100] ss:$24 sps:$4 sm:$0xff]   ;;  %v799_v62 = vld [vmem:[#allocation4 + $0xd0] ss:$24 sps:$4 sm:$0xff]   ;;  %v804_v63 = vld [vmem:[#allocation4 + $0xa4] ss:$24 sps:$4 sm:$0xff]   ;;  %v588_v17 = vlaneseq }
  0x2e   :  { %713 = vmatpush3.bf16.msra.mxu0 %v738_v11  ;;  %v53_v22 = vadd.f32 1.0, %v815_v19  ;;  %v807_v1 = vld [vmem:[#allocation4 + $0x74] ss:$24 sps:$4 sm:$0xff]   ;;  %v805_v2 = vld [vmem:[#allocation4 + $0x70] ss:$24 sps:$4 sm:$0xff]  }
  0x2f   :  { %714 = vmatprep.subr.bf16.mxu0 %v870_v0  ;;  %v810_v3 = vld [vmem:[#allocation4 + $0x44] ss:$24 sps:$4 sm:$0xff]   ;;  %v808_v4 = vld [vmem:[#allocation4 + $0x40] ss:$24 sps:$4 sm:$0xff]   ;;  %v813_v5 = vld [vmem:[#allocation4 + $0x14] ss:$24 sps:$4 sm:$0xff]  }
  0x30   :  { %816 = vrcp.f32 %v53_v22  ;;  %462 = vmatpush1.bf16.msra.mxu1 %v768_v21  ;;  %v811_v6 = vld [vmem:[#allocation4 + $0x10] ss:$24 sps:$4 sm:$0xff]   ;;  %v589_v19 = vshrl.u32 %v588_v17, 7  ;;  %vm629_vm1 = vcmp.lt.s32.totalorder %v588_v17, 768 }
  0x31   :  { %463 = vmatprep.subr.bf16.mxu1 %v772_v24 }
  0x32   :  { %715 = vmatpush3.bf16.msra.mxu0 %v739_v15  ;;  %v873_v15 = vmov 1966171168  }
  0x33   :  { %716 = vmatprep.subr.bf16.mxu0 %v870_v0  ;;  %v586_v16 = vunpack.c.l.s4 %v873_v15 }
  0x34   :  { %464 = vmatpush1.bf16.msra.mxu1 %v774_v25 }
  0x35   :  { %465 = vmatprep.subr.bf16.mxu1 %v778_v26 }
  0x36   :  { %717 = vmatpush3.bf16.msra.mxu0 %v740_v18  ;;  %v587_v18 = vunpack.c.0.s8 %v586_v16 }
  0x37   :  { %718 = vmatprep.subr.bf16.mxu0 %v870_v0  ;;  %v802_v0 = vld [vmem:[#allocation4 + $0xa0] ss:$24 sps:$4 sm:$0xff]  }
  0x38   :  { %466 = vmatpush1.bf16.msra.mxu1 %v780_v27  ;;  %v590_v21 = vsub.s32 %v587_v18, %v589_v19 }
  0x39   :  { %467 = vmatprep.subr.bf16.mxu1 %v784_v43 }
  0x3a   :  { %719 = vmatpush3.bf16.msra.mxu0 %v741_v20 }
  0x3b   :  { %494 = vmatprep.subr.bf16.mxu0 %v747_v23 }
  0x3c   :  { %468 = vmatpush1.bf16.msra.mxu1 %v786_v44 }
  0x3d   :  { %v817_v28 = vpop.eup %816  ;;  %535 = vmatprep.subr.bf16.mxu1 %v792_v47 }
  0x3e   :  { %v56_v30 = vpack.c.bf16 %v817_v28, %v817_v28 }
  0x40   :  { %721 = vmatmul.mubr.bf16.vlgmr.msra.gmra.mxu0 %v56_v30 }
  0x41   :  { %495 = vmatpush1.bf16.msra.mxu0 %v745_v29  ;;  %526 = vmatprep.mubr.bf16.mxu0 %v872_v48 }
  0x42   :  { %496 = vmatprep.subr.bf16.mxu0 %v753_v31 }
  0x45   :  { %497 = vmatpush1.bf16.msra.mxu0 %v751_v32 }
  0x46   :  { %498 = vmatprep.subr.bf16.mxu0 %v759_v33 }
  0x49   :  { %499 = vmatpush1.bf16.msra.mxu0 %v757_v34  ;;  %v163_v34 = vld [vmem:[%s926_s4] sm:$0x3f] }
  0x4a   :  { %500 = vmatprep.subr.bf16.mxu0 %v765_v35 }
  0x4d   :  { %501 = vmatpush1.bf16.msra.mxu0 %v763_v36 }
  0x4e   :  { %502 = vmatprep.subr.bf16.mxu0 %v771_v37 }
  0x51   :  { %503 = vmatpush1.bf16.msra.mxu0 %v769_v38 }
  0x52   :  { %504 = vmatprep.subr.bf16.mxu0 %v777_v39 }
  0x55   :  { %505 = vmatpush1.bf16.msra.mxu0 %v775_v40 }
  0x56   :  { %506 = vmatprep.subr.bf16.mxu0 %v783_v41 }
  0x59   :  { %507 = vmatpush1.bf16.msra.mxu0 %v781_v42 }
  0x5a   :  { %508 = vmatprep.subr.bf16.mxu0 %v789_v45 }
  0x5d   :  { %509 = vmatpush1.bf16.msra.mxu0 %v787_v46 }
 0x100   :  { %v155_v50 = vpop.f32.mrf.mxu0 }
 0x101   :  { %v162_v51 = vadd.f32 %v161_v49, %v155_v50 }
 0x102   :  { %v722_v52 = vpop.f32.mrf.mxu0 }
 0x103   :  { %v164_v54 = vpack.c.bf16 %v162_v51, %v162_v51 }
 0x104   :  { %v158_v56 = vpop.f32.mrf.mxu0 }
 0x105   :  { %486 = vmatmul.mubr.bf16.vlgmr.msra.gmra.mxu1 %v164_v54  ;;  %527 = vmatmul.mubr.bf16.vlgmr.msra.gmra.mxu0 %v164_v54 }
 0x106   :  { %536 = vmatpush1.bf16.msra.mxu1 %v790_v53  ;;  %v723_v57 = vpop.f32.mrf.mxu0  ;;  %567 = vmatprep.mubr.bf16.mxu1 %v872_v48 }
 0x107   :  { %537 = vmatprep.subr.bf16.mxu1 %v795_v55 }
 0x10a   :  { %538 = vmatpush1.bf16.msra.mxu1 %v793_v58 }
 0x10b   :  { %539 = vmatprep.subr.bf16.mxu1 %v798_v59 }
 0x10e   :  { %540 = vmatpush1.bf16.msra.mxu1 %v796_v60 }
 0x10f   :  { %541 = vmatprep.subr.bf16.mxu1 %v801_v61 }
 0x112   :  { %542 = vmatpush1.bf16.msra.mxu1 %v799_v62 }
 0x113   :  { %543 = vmatprep.subr.bf16.mxu1 %v804_v63 }
 0x116   :  { %544 = vmatpush1.bf16.msra.mxu1 %v802_v0 }
 0x117   :  { %545 = vmatprep.subr.bf16.mxu1 %v807_v1 }
 0x11a   :  { %546 = vmatpush1.bf16.msra.mxu1 %v805_v2 }
 0x11b   :  { %547 = vmatprep.subr.bf16.mxu1 %v810_v3 }
 0x11e   :  { %548 = vmatpush1.bf16.msra.mxu1 %v808_v4 }
 0x11f   :  { %549 = vmatprep.subr.bf16.mxu1 %v813_v5 }
 0x122   :  { %550 = vmatpush1.bf16.msra.mxu1 %v811_v6 }
 0x125   :  { %568 = vmatmul.mubr.bf16.vlgmr.msra.gmra.mxu1 %v164_v54 }
 0x1c5   :  { %v487_v7 = vpop.f32.mrf.mxu1  ;;  %v528_v8 = vpop.f32.mrf.mxu0 }
 0x1c7   :  { %v489_v9 = vpop.f32.mrf.mxu1  ;;  %v530_v10 = vpop.f32.mrf.mxu0 }
 0x1c8   :  { %v582_v20 = vcombine.low %v487_v7, %v489_v9  ;;  %v583_v22 = vcombine.low %v528_v8, %v530_v10 }
 0x1c9   :  { %v491_v11 = vpop.f32.mrf.mxu1  ;;  %v532_v12 = vpop.f32.mrf.mxu0 }
 0x1ca   :  { %v591_v23 = vrot.slane %v582_v20, %v590_v21  ;;  %v598_v24 = vrot.slane %v583_v22, %v590_v21 }
 0x1cb   :  { %v492_v13 = vpop.f32.mrf.mxu1  ;;  %v533_v14 = vpop.f32.mrf.mxu0 }
 0x1cc   :  { %v606_v27 = vcombine.low %v591_v23, %v598_v24 }
 0x1ce   :  { %v613_v32 = vrot.slane %v606_v27, %v590_v21 }
 0x1e5   :  { %v569_v25 = vpop.f32.mrf.mxu1 }
 0x1e7   :  { %v571_v26 = vpop.f32.mrf.mxu1 }
 0x1e8   :  { %v584_v28 = vcombine.low %v569_v25, %v571_v26 }
 0x1e9   :  { %v573_v29 = vpop.f32.mrf.mxu1 }
 0x1ea   :  { %v605_v30 = vrot.slane %v584_v28, %v590_v21 }
 0x1eb   :  { %v574_v31 = vpop.f32.mrf.mxu1 }
 0x1ec   :  { %v620_v33 = vrot.slane %v605_v30, %v590_v21 }
 0x1ee   :  { %v621_v35 = vcombine.low %v613_v32, %v620_v33 }
 0x1f0   :  { %v623_v36 = vadd.f32 %v621_v35, %v163_v34 }
 0x1f2   :  { %818 = vtanh.f32 %v623_v36 }
 0x1ff   :  { %v819_v37 = vpop.eup %818 }
 0x200   :  { %v625_v38 = vadd.f32 1.0, %v819_v37 }
 0x202   :  { %v626_v39 = vmul.f32 0.5, %v625_v38 }
 0x204   :  { %631 = vst.msk [vmem:[%s927_s5] sm:$0x3f] %vm629_vm1, %v626_v39 }
 0x205   :  { %636 = vsyncpa [#allocation3], 1 }
 0x206   :  { %637 = vsyncpa [#allocation5], 1 }

</bundles_post_ra>
